<compile_context>
chip_gen: v7x
topology: tpu7x:2x2x1
jax: 0.10.0
libtpu: 0.0.40
codegen_flags: <defaults>
</compile_context>

<pallas_src>
import functools
import itertools
import math

import jax
import jax.numpy as jnp
from jax.experimental import pallas as pl
from jax.experimental.pallas import tpu as pltpu


def _pbg_output_head_kernel(x_ref, sign_ref, erf_ref, out_ref, *,
                            in_features, tile_bits):
    """One (batch-tile, S-tile) grid step.

    x_ref:    (tb, d)          f32  batch tile of activations (resident across k)
    sign_ref: (tile_bits, ts)  f32  +/-0.5 sign rows for the lane-varying bits
                                    (independent of k; constant index_map)
    erf_ref:  (1, ts)          f32  erf((s_j . w + b) / sqrt(2 d)) for this S tile
    out_ref:  (tb, 1)          f32  head output block (k-resident accumulator)
    """
    k = pl.program_id(1)

    @pl.when(k == 0)
    def _init():
        out_ref[...] = jnp.zeros_like(out_ref)

    x = x_ref[...]                                   # (tb, d)
    sign_half = sign_ref[...]                        # (tile_bits, ts), values +/-0.5
    hi_bits = in_features - tile_bits                # features resolved by the S-tile idx

    # Lane-varying factors: p[b, l] = prod_i (0.5 + x[b, i] * sign_half[i, l]).
    # First factor initializes p directly (no multiply by ones).
    p = 0.5 + x[:, hi_bits:hi_bits + 1] * sign_half[0:1, :]            # (tb, ts)
    for t in range(1, tile_bits):
        i = hi_bits + t
        p = p * (0.5 + x[:, i:i + 1] * sign_half[t:t + 1, :])          # (tb, ts)

    # Features whose sign is constant within this S tile contribute one per-batch
    # scalar factor (partial Kronecker factorization). Sign of feature i is bit
    # (d - 1 - i) of the global pattern index j = k * ts + l (itertools.product order).
    if hi_bits:
        xh = x * 0.5                                                    # hoisted 0.5*x
        bit0 = (k >> (hi_bits - 1)) & 1
        q = 0.5 + (2 * bit0 - 1).astype(jnp.float32) * xh[:, 0:1]       # (tb, 1)
        for i in range(1, hi_bits):
            bit = (k >> (hi_bits - 1 - i)) & 1
            q = q * (0.5 + (2 * bit - 1).astype(jnp.float32) * xh[:, i:i + 1])
        p = p * q                                                       # (tb, ts)

    # o == 1 head: VPU multiply + XLU lane reduction (no (S, 1) MXU matmul).
    e = erf_ref[...]                                                    # (1, ts) f32
    out_ref[...] += jnp.sum(p * e, axis=-1, keepdims=True)              # (tb, 1)


def build_erf_table(weight, bias, *, chunk=1 << 16):
    """Parameter-only (input independent) erf table, lane-dense (1, 2^d) f32.

    Built in chunks so HBM footprint stays O(S) even for large d (never materializes
    the full (S, d) sign matrix). Callers should cache this across forward calls.
    Ordering matches the kernel's bit convention: sign of feature i at pattern j is
    +1 iff bit (d - 1 - i) of j is 1 (== itertools.product([-1, 1], repeat=d) order).
    """
    o, d = weight.shape
    assert o == 1
    S = 1 << d
    w = weight.reshape(d).astype(jnp.float32)
    b0 = bias.reshape(-1)[0].astype(jnp.float32)
    shifts = (d - 1 - jnp.arange(d, dtype=jnp.int32))[None, :]
    step = min(chunk, S)
    pieces = []
    for start in range(0, S, step):
        j = (start + jnp.arange(step, dtype=jnp.int32))[:, None]        # (step, 1)
        s = (2 * ((j >> shifts) & 1) - 1).astype(jnp.float32)           # (step, d)
        lin = s @ w + b0                                                 # (step,)
        pieces.append(jax.scipy.special.erf(lin / math.sqrt(2.0 * d)))
    return jnp.concatenate(pieces).reshape(1, S)


def _build_sign_table(tile_bits, ts):
    """(tile_bits, ts) table of +/-0.5 signs for the lane-varying pattern bits."""
    l = jnp.arange(ts, dtype=jnp.int32)[None, :]
    shifts = (tile_bits - 1 - jnp.arange(tile_bits, dtype=jnp.int32))[:, None]
    bits = (l >> shifts) & 1
    return bits.astype(jnp.float32) - 0.5            # bit==1 -> +0.5, bit==0 -> -0.5


def pbg_output_head_forward(x, weight, bias, *, batch_tile=16, s_tile=1024,
                            erf_row=None):
    """Exact-expectation forward of PBGNet's output PBGLayer (out_features == 1).

    x:      (B, d) f32  previous-layer activations (each in [-1, 1])
    weight: (1, d) f32
    bias:   (1,)   f32
    returns (B, 1) f32

    Tile guidance: keep tb * ts around 16K-64K f32 elements for the live p tensor, and
    on v7x keep >= 2 batch tiles (one per TensorCore) when B permits.
    """
    B, d = x.shape
    o = weight.shape[0]
    if o != 1:
        raise NotImplementedError("output head kernel supports out_features == 1")
    S = 1 << d

    ts = min(s_tile, S)
    tile_bits = ts.bit_length() - 1
    assert (1 << tile_bits) == ts, "s_tile must be a power of two"
    assert ts == S or ts % 128 == 0, "S tile must be lane-aligned (multiple of 128)"

    tb = batch_tile
    B_pad = ((B + tb - 1) // tb) * tb
    assert tb % 8 == 0 or B_pad == tb, "batch tile must be x8-aligned or cover the batch"
    x_p = x if B_pad == B else jnp.pad(x, ((0, B_pad - B), (0, 0)))

    if erf_row is None:
        erf_row = build_erf_table(weight, bias)                      # (1, S) f32
    sign_half = _build_sign_table(tile_bits, ts)                     # (tile_bits, ts)

    kernel = functools.partial(_pbg_output_head_kernel,
                               in_features=d, tile_bits=tile_bits)
    out = pl.pallas_call(
        kernel,
        out_shape=jax.ShapeDtypeStruct((B_pad, 1), jnp.float32),
        grid=(B_pad // tb, S // ts),
        in_specs=[
            pl.BlockSpec((tb, d), lambda b, k: (b, 0)),          # x tile, resident over k
            pl.BlockSpec((tile_bits, ts), lambda b, k: (0, 0)),  # constant sign rows
            pl.BlockSpec((1, ts), lambda b, k: (0, k)),          # f32 erf row tile
        ],
        out_specs=pl.BlockSpec((tb, 1), lambda b, k: (b, 0)),    # k-resident accumulator
        compiler_params=pltpu.CompilerParams(
            # Batch axis parallel (megacore on v7x); S axis MUST stay arbitrary
            # because out_ref accumulates across it.
            dimension_semantics=("parallel", "arbitrary"),
            # Tiles here are KiB-scale; 32 MiB is ample and also fits the smaller
            # v7x VMEM (64 MiB physical). Raise together with s_tile for large S.
            vmem_limit_bytes=32 * 1024 * 1024,
        ),
    )(x_p, sign_half, erf_row)
    return out[:B]


def _reference(x, weight, bias):
    """Pure-JAX transcription of the exact-expectation forward (PBCombi form)."""
    d = x.shape[1]
    s = jnp.asarray(list(itertools.product([-1.0, 1.0], repeat=d)), dtype=jnp.float32)
    p_s = 0.5 + 0.5 * x[:, :, None] * s.T[None, :, :]        # (B, d, S)
    p_s_m = jnp.prod(p_s, axis=1)                            # (B, S)
    erf_value = jax.scipy.special.erf(
        (s @ weight.T + bias[None, :]) / math.sqrt(2.0 * d)
    )                                                        # (S, 1)
    return p_s_m @ erf_value                                 # (B, 1)


if __name__ == "__main__":
    in_features = 10      # S = 2^10 = 1024 sign patterns
    batch = 16

    key = jax.random.PRNGKey(0)
    kw, kb, kx = jax.random.split(key, 3)
    weight = jax.random.normal(kw, (1, in_features), jnp.float32) * 0.5
    bias = jax.random.normal(kb, (1,), jnp.float32) * 0.1
    # PBGNet hidden activations are averaged erf values, i.e. values in (-1, 1).
    x = jax.random.uniform(kx, (batch, in_features), jnp.float32,
                           minval=-1.0, maxval=1.0)

    ref = _reference(x, weight, bias)

    # Primary config: whole S in one tile, 2 parallel batch tiles (v7x megacore).
    out = pbg_output_head_forward(x, weight, bias, batch_tile=8, s_tile=1024)
    out = jax.block_until_ready(out)
    assert out.shape == (batch, 1), out.shape
    assert jnp.allclose(out, ref, atol=1e-4, rtol=1e-4), (out, ref)

    # Secondary config: tiled S axis (exercises the hi-bit / accumulator path).
    out2 = pbg_output_head_forward(x, weight, bias, batch_tile=16, s_tile=256)
    out2 = jax.block_until_ready(out2)
    assert jnp.allclose(out2, ref, atol=1e-4, rtol=1e-4), (out2, ref)

    print("KERNEL_OK")
</pallas_src>

<mosaic_0001>
module attributes {stable_mosaic.version = 11 : i64} {
  func.func @_pbg_output_head_kernel(%arg0: i32, %arg1: i32, %arg2: memref<8x10xf32, #tpu.memory_space<vmem>>, %arg3: memref<10x1024xf32, #tpu.memory_space<vmem>>, %arg4: memref<1x1024xf32, #tpu.memory_space<vmem>>, %arg5: memref<8x1xf32, #tpu.memory_space<vmem>>) attributes {dimension_semantics = [#tpu.dimension_semantics<parallel>, #tpu.dimension_semantics<arbitrary>], iteration_bounds = array<i64: 2, 1>, scalar_prefetch = 0 : i64, scratch_operands = 0 : i64, tpu.core_type = #tpu.core_type<tc>, window_params = [{transform_indices = @transform_0, window_bounds = array<i64: 8, 10>}, {pipeline_mode = #tpu.pipeline_mode<synchronous>, transform_indices = @transform_1, window_bounds = array<i64: 10, 1024>}, {transform_indices = @transform_2, window_bounds = array<i64: 1, 1024>}, {transform_indices = @transform_3, window_bounds = array<i64: 8, 1>}]} {
    %c0_i32 = arith.constant 0 : i32
    %0 = arith.cmpi eq, %arg1, %c0_i32 : i32
    %1 = arith.extui %0 : i1 to i32
    %c0_i32_0 = arith.constant 0 : i32
    %2 = arith.cmpi ne, %1, %c0_i32_0 : i32
    scf.if %2 {
      %cst_20 = arith.constant 0.000000e+00 : f32
      %92 = vector.broadcast %cst_20 : f32 to vector<8x1xf32>
      %c0_21 = arith.constant 0 : index
      %c0_22 = arith.constant 0 : index
      %93 = vector.load %arg5[%c0_21, %c0_22] : memref<8x1xf32, #tpu.memory_space<vmem>>, vector<8x1xf32>
      tpu.vector_store %arg5[%c0_21, %c0_22], %92 {strides = array<i32>} : memref<8x1xf32, #tpu.memory_space<vmem>>, vector<8x1xf32>,
    } else {
    }
    %c0 = arith.constant 0 : index
    %c0_1 = arith.constant 0 : index
    %3 = vector.load %arg2[%c0, %c0_1] : memref<8x10xf32, #tpu.memory_space<vmem>>, vector<8x10xf32>
    %c0_2 = arith.constant 0 : index
    %c0_3 = arith.constant 0 : index
    %4 = vector.load %arg3[%c0_2, %c0_3] : memref<10x1024xf32, #tpu.memory_space<vmem>>, vector<10x1024xf32>
    %5 = vector.extract_strided_slice %3 {offsets = [0, 0], sizes = [8, 1], strides = [1, 1]} : vector<8x10xf32> to vector<8x1xf32>
    %6 = vector.extract_strided_slice %4 {offsets = [0, 0], sizes = [1, 1024], strides = [1, 1]} : vector<10x1024xf32> to vector<1x1024xf32>
    %7 = vector.broadcast %5 : vector<8x1xf32> to vector<8x1024xf32>
    %8 = vector.broadcast %6 : vector<1x1024xf32> to vector<8x1024xf32>
    %9 = arith.mulf %7, %8 : vector<8x1024xf32>
    %cst = arith.constant 5.000000e-01 : f32
    %10 = vector.broadcast %cst : f32 to vector<8x1024xf32>
    %11 = arith.addf %10, %9 : vector<8x1024xf32>
    %12 = vector.extract_strided_slice %3 {offsets = [0, 1], sizes = [8, 1], strides = [1, 1]} : vector<8x10xf32> to vector<8x1xf32>
    %13 = vector.extract_strided_slice %4 {offsets = [1, 0], sizes = [1, 1024], strides = [1, 1]} : vector<10x1024xf32> to vector<1x1024xf32>
    %14 = vector.broadcast %12 : vector<8x1xf32> to vector<8x1024xf32>
    %15 = vector.broadcast %13 : vector<1x1024xf32> to vector<8x1024xf32>
    %16 = arith.mulf %14, %15 : vector<8x1024xf32>
    %cst_4 = arith.constant 5.000000e-01 : f32
    %17 = vector.broadcast %cst_4 : f32 to vector<8x1024xf32>
    %18 = arith.addf %17, %16 : vector<8x1024xf32>
    %19 = arith.mulf %11, %18 : vector<8x1024xf32>
    %20 = vector.extract_strided_slice %3 {offsets = [0, 2], sizes = [8, 1], strides = [1, 1]} : vector<8x10xf32> to vector<8x1xf32>
    %21 = vector.extract_strided_slice %4 {offsets = [2, 0], sizes = [1, 1024], strides = [1, 1]} : vector<10x1024xf32> to vector<1x1024xf32>
    %22 = vector.broadcast %20 : vector<8x1xf32> to vector<8x1024xf32>
    %23 = vector.broadcast %21 : vector<1x1024xf32> to vector<8x1024xf32>
    %24 = arith.mulf %22, %23 : vector<8x1024xf32>
    %cst_5 = arith.constant 5.000000e-01 : f32
    %25 = vector.broadcast %cst_5 : f32 to vector<8x1024xf32>
    %26 = arith.addf %25, %24 : vector<8x1024xf32>
    %27 = arith.mulf %19, %26 : vector<8x1024xf32>
    %28 = vector.extract_strided_slice %3 {offsets = [0, 3], sizes = [8, 1], strides = [1, 1]} : vector<8x10xf32> to vector<8x1xf32>
    %29 = vector.extract_strided_slice %4 {offsets = [3, 0], sizes = [1, 1024], strides = [1, 1]} : vector<10x1024xf32> to vector<1x1024xf32>
    %30 = vector.broadcast %28 : vector<8x1xf32> to vector<8x1024xf32>
    %31 = vector.broadcast %29 : vector<1x1024xf32> to vector<8x1024xf32>
    %32 = arith.mulf %30, %31 : vector<8x1024xf32>
    %cst_6 = arith.constant 5.000000e-01 : f32
    %33 = vector.broadcast %cst_6 : f32 to vector<8x1024xf32>
    %34 = arith.addf %33, %32 : vector<8x1024xf32>
    %35 = arith.mulf %27, %34 : vector<8x1024xf32>
    %36 = vector.extract_strided_slice %3 {offsets = [0, 4], sizes = [8, 1], strides = [1, 1]} : vector<8x10xf32> to vector<8x1xf32>
    %37 = vector.extract_strided_slice %4 {offsets = [4, 0], sizes = [1, 1024], strides = [1, 1]} : vector<10x1024xf32> to vector<1x1024xf32>
    %38 = vector.broadcast %36 : vector<8x1xf32> to vector<8x1024xf32>
    %39 = vector.broadcast %37 : vector<1x1024xf32> to vector<8x1024xf32>
    %40 = arith.mulf %38, %39 : vector<8x1024xf32>
    %cst_7 = arith.constant 5.000000e-01 : f32
    %41 = vector.broadcast %cst_7 : f32 to vector<8x1024xf32>
    %42 = arith.addf %41, %40 : vector<8x1024xf32>
    %43 = arith.mulf %35, %42 : vector<8x1024xf32>
    %44 = vector.extract_strided_slice %3 {offsets = [0, 5], sizes = [8, 1], strides = [1, 1]} : vector<8x10xf32> to vector<8x1xf32>
    %45 = vector.extract_strided_slice %4 {offsets = [5, 0], sizes = [1, 1024], strides = [1, 1]} : vector<10x1024xf32> to vector<1x1024xf32>
    %46 = vector.broadcast %44 : vector<8x1xf32> to vector<8x1024xf32>
    %47 = vector.broadcast %45 : vector<1x1024xf32> to vector<8x1024xf32>
    %48 = arith.mulf %46, %47 : vector<8x1024xf32>
    %cst_8 = arith.constant 5.000000e-01 : f32
    %49 = vector.broadcast %cst_8 : f32 to vector<8x1024xf32>
    %50 = arith.addf %49, %48 : vector<8x1024xf32>
    %51 = arith.mulf %43, %50 : vector<8x1024xf32>
    %52 = vector.extract_strided_slice %3 {offsets = [0, 6], sizes = [8, 1], strides = [1, 1]} : vector<8x10xf32> to vector<8x1xf32>
    %53 = vector.extract_strided_slice %4 {offsets = [6, 0], sizes = [1, 1024], strides = [1, 1]} : vector<10x1024xf32> to vector<1x1024xf32>
    %54 = vector.broadcast %52 : vector<8x1xf32> to vector<8x1024xf32>
    %55 = vector.broadcast %53 : vector<1x1024xf32> to vector<8x1024xf32>
    %56 = arith.mulf %54, %55 : vector<8x1024xf32>
    %cst_9 = arith.constant 5.000000e-01 : f32
    %57 = vector.broadcast %cst_9 : f32 to vector<8x1024xf32>
    %58 = arith.addf %57, %56 : vector<8x1024xf32>
    %59 = arith.mulf %51, %58 : vector<8x1024xf32>
    %60 = vector.extract_strided_slice %3 {offsets = [0, 7], sizes = [8, 1], strides = [1, 1]} : vector<8x10xf32> to vector<8x1xf32>
    %61 = vector.extract_strided_slice %4 {offsets = [7, 0], sizes = [1, 1024], strides = [1, 1]} : vector<10x1024xf32> to vector<1x1024xf32>
    %62 = vector.broadcast %60 : vector<8x1xf32> to vector<8x1024xf32>
    %63 = vector.broadcast %61 : vector<1x1024xf32> to vector<8x1024xf32>
    %64 = arith.mulf %62, %63 : vector<8x1024xf32>
    %cst_10 = arith.constant 5.000000e-01 : f32
    %65 = vector.broadcast %cst_10 : f32 to vector<8x1024xf32>
    %66 = arith.addf %65, %64 : vector<8x1024xf32>
    %67 = arith.mulf %59, %66 : vector<8x1024xf32>
    %68 = vector.extract_strided_slice %3 {offsets = [0, 8], sizes = [8, 1], strides = [1, 1]} : vector<8x10xf32> to vector<8x1xf32>
    %69 = vector.extract_strided_slice %4 {offsets = [8, 0], sizes = [1, 1024], strides = [1, 1]} : vector<10x1024xf32> to vector<1x1024xf32>
    %70 = vector.broadcast %68 : vector<8x1xf32> to vector<8x1024xf32>
    %71 = vector.broadcast %69 : vector<1x1024xf32> to vector<8x1024xf32>
    %72 = arith.mulf %70, %71 : vector<8x1024xf32>
    %cst_11 = arith.constant 5.000000e-01 : f32
    %73 = vector.broadcast %cst_11 : f32 to vector<8x1024xf32>
    %74 = arith.addf %73, %72 : vector<8x1024xf32>
    %75 = arith.mulf %67, %74 : vector<8x1024xf32>
    %76 = vector.extract_strided_slice %3 {offsets = [0, 9], sizes = [8, 1], strides = [1, 1]} : vector<8x10xf32> to vector<8x1xf32>
    %77 = vector.extract_strided_slice %4 {offsets = [9, 0], sizes = [1, 1024], strides = [1, 1]} : vector<10x1024xf32> to vector<1x1024xf32>
    %78 = vector.broadcast %76 : vector<8x1xf32> to vector<8x1024xf32>
    %79 = vector.broadcast %77 : vector<1x1024xf32> to vector<8x1024xf32>
    %80 = arith.mulf %78, %79 : vector<8x1024xf32>
    %cst_12 = arith.constant 5.000000e-01 : f32
    %81 = vector.broadcast %cst_12 : f32 to vector<8x1024xf32>
    %82 = arith.addf %81, %80 : vector<8x1024xf32>
    %83 = arith.mulf %75, %82 : vector<8x1024xf32>
    %c0_13 = arith.constant 0 : index
    %c0_14 = arith.constant 0 : index
    %84 = vector.load %arg4[%c0_13, %c0_14] : memref<1x1024xf32, #tpu.memory_space<vmem>>, vector<1x1024xf32>
    %c0_15 = arith.constant 0 : index
    %c0_16 = arith.constant 0 : index
    %85 = vector.load %arg5[%c0_15, %c0_16] : memref<8x1xf32, #tpu.memory_space<vmem>>, vector<8x1xf32>
    %86 = vector.broadcast %84 : vector<1x1024xf32> to vector<8x1024xf32>
    %87 = arith.mulf %83, %86 : vector<8x1024xf32>
    %cst_17 = arith.constant dense<0.000000e+00> : vector<8xf32>
    %88 = vector.multi_reduction <add>, %87, %cst_17 [1] : vector<8x1024xf32> to vector<8xf32>
    %89 = vector.shape_cast %88 : vector<8xf32> to vector<8x1xf32>
    %90 = arith.addf %85, %89 : vector<8x1xf32>
    %c0_18 = arith.constant 0 : index
    %c0_19 = arith.constant 0 : index
    %91 = vector.load %arg5[%c0_18, %c0_19] : memref<8x1xf32, #tpu.memory_space<vmem>>, vector<8x1xf32>
    tpu.vector_store %arg5[%c0_18, %c0_19], %90 {strides = array<i32>} : memref<8x1xf32, #tpu.memory_space<vmem>>, vector<8x1xf32>,
    return
  }
  func.func @transform_0(%arg0: i32, %arg1: i32) -> (i32, i32) {
    %c0_i32 = arith.constant 0 : i32
    %c0_i32_0 = arith.constant 0 : i32
    return %arg0, %c0_i32 : i32, i32
  }
  func.func @transform_1(%arg0: i32, %arg1: i32) -> (i32, i32) {
    %c0_i32 = arith.constant 0 : i32
    %c0_i32_0 = arith.constant 0 : i32
    %c0_i32_1 = arith.constant 0 : i32
    return %c0_i32, %c0_i32_0 : i32, i32
  }
  func.func @transform_2(%arg0: i32, %arg1: i32) -> (i32, i32) {
    %c0_i32 = arith.constant 0 : i32
    %c0_i32_0 = arith.constant 0 : i32
    return %c0_i32, %arg1 : i32, i32
  }
  func.func @transform_3(%arg0: i32, %arg1: i32) -> (i32, i32) {
    %c0_i32 = arith.constant 0 : i32
    %c0_i32_0 = arith.constant 0 : i32
    return %arg0, %c0_i32 : i32, i32
  }
}

</mosaic_0001>

<bundles_post_ra>
// kernel: tpu_custom_call.1
= control target key start
LH: loop header
LB: loop body
LE: loop exit
PB: predicated region body
PF: predicated region fallthrough
CT: control target
= control target key end

     0   :  { %8 = vsyncpa [#allocation3], 0  ;;  %s2052_s0 = inlined_call_operand.hbm [shape: f32[16,10], index: 0, kind: input, shape index: {}]   ;;  %s2053_s1 = inlined_call_operand.hbm [shape: f32[10,1024], index: 1, kind: input, shape index: {}]   ;;  %s2054_s2 = inlined_call_operand.hbm [shape: f32[1,1024], index: 2, kind: input, shape index: {}]   ;;  %s2055_s3 = inlined_call_operand.vmem [shape: f32[16,1], index: 3, kind: output, shape index: {}]  }
   0x1   :  { %10 = vsyncpa [#allocation3 + $0x1], 0 }
   0x2   :  { %11 = vsyncpa [#allocation5], 0  ;;  %s1300_s12 = smov 0   ;;  %s1302_s13 = smov 0  }
   0x3   :  { %s1304_s14 = smov 0   ;;  %s1306_s15 = smov 0  }
   0x4   :  { %s1308_s16 = smov 0   ;;  %s1310_s17 = smov 0  }
   0x5 LB: > { %s1007_s18 = sadd.s32 4294967295, %s1262_s17   ;;  %p49_p0 = scmp.ne.s32.totalorder %s1246_s13, %s1242_s12  ;;  %s1262_s17 = sphi %s1310_s17, %s17_s17   ;;  %s1258_s16 = sphi %s1308_s16, %s2164_s16   ;;  %s1254_s15 = sphi %s1306_s15, %s2163_s15   ;;  %s1250_s14 = sphi %s1304_s14, %s2162_s14   ;;  %s1246_s13 = sphi %s1302_s13, %s2161_s13   ;;  %s1242_s12 = sphi %s1300_s12, %s2160_s12  }
   0x6   : > { %p1330_p1 = scmp.eq.s32.totalorder %s1007_s18, 0  ;;  %p1009_p2 = scmp.ge.s32.totalorder %s1262_s17, 1 }
   0x7   : > { %p133_p3 = scmp.lt.s32.totalorder %s1262_s17, 3  ;;  %s1264_s22 = smov [#allocation4]  }
   0x8   : > { %s2072_s19 = scalar_select %p1330_p1, 1, 0 }
   0x9   : > { %p1338_p4 = por %p1330_p1, %p49_p0  ;;  %p1342_p5 = pnand %p1009_p2, %p133_p3 }
   0xa   : > { %s145_s23 = sshll.u32 %s1264_s22, 4  ;;  %s1265_s25 = smov [#allocation6]   ;;  %s146_s23 = int_to_ptr.vmem [resolvable:$true] %s145_s23 }
   0xb   : > { %s2073_s20 = scalar_select %p1338_p4, 1, 0 }
   0xc   : > { %s2074_s21 = scalar_select %p1342_p5, 1, 0 }
   0xd   : > { %p1032_p6 = pneg %p1342_p5  ;;  %s162_s26 = sshll.u32 %s1265_s25, 4  ;;  %s1354_s26 = int_to_ptr.vmem [resolvable:$true] %s162_s26 }
   0xe   : > { %s1122_s29 = scalar_lea.hbm %s2053_s1, 2048 }
   0xf   : > { %p1350_p7 = pnand %p1032_p6, %p1330_p1  ;;  %p1123_p8 = scmp.ne.s32.totalorder %s2053_s1, %s1122_s29 }
  0x10   : > { %p1129_p12 = scmp.lt.u32.totalorder %s1122_s29, %s2053_s1 }
  0x11   : > { %p1124_p9 = pneg %p1350_p7 }
  0x13   : > { %p1125_p10 = pnand %p1124_p9, %p1123_p8 }
  0x15   : > { %p1126_p11 = pneg %p1125_p10 }
  0x17   : > { %p1131_p13 = pnand %p1129_p12, %p1126_p11 }
  0x19   : > { %1134 = shalt.err (!%p1131_p13)
}
  0x1a   : > { %s1135_s7 = scalar_lea.vmem %s146_s23, 2048  ;;  %p1143_p6 = scmp.lt.s32.totalorder %s146_s23, %s146_s23 }
  0x1b   : > { %p1136_p0 = scmp.ne.s32.totalorder %s146_s23, %s1135_s7  ;;  %p1144_p1 = scmp.lt.s32.totalorder %s1135_s7, %s1135_s7 }
  0x1d   : > { %p1138_p2 = pnand %p1136_p0, %p1124_p9  ;;  %p1145_p4 = por %p1144_p1, %p1143_p6 }
  0x1f   : > { %p1139_p3 = pneg %p1138_p2 }
  0x21   : > { %p1146_p5 = pnand %p1145_p4, %p1139_p3 }
  0x23   : > { %1149 = shalt.err (!%p1146_p5)
}
  0x24   : > { %s1266_s8 = smov 1024   ;;  %s1267_s9 = smov 64  }
  0x25   : > { %1035 = dma.hbm_to_vmem [thread:$0]  (!%p1350_p7), %s2053_s1, 2048, %s146_s23, [#allocation5], %s1266_s8, %s1266_s8, %s1267_s9  }
  0x26   : > { %s1150_s22 = scalar_lea.hbm %s2054_s2, 128 }
  0x27   : > { %p1151_p8 = scmp.ne.s32.totalorder %s2054_s2, %s1150_s22  ;;  %p1157_p5 = scmp.lt.u32.totalorder %s1150_s22, %s2054_s2 }
  0x29   : > { %p1153_p1 = pnand %p1151_p8, %p1124_p9 }
  0x2b   : > { %p1154_p4 = pneg %p1153_p1 }
  0x2d   : > { %p1159_p10 = pnand %p1157_p5, %p1154_p4 }
  0x2f   : > { %1162 = shalt.err (!%p1159_p10)
}
  0x30   : > { %s1163_s23 = scalar_lea.vmem %s1354_s26, 128  ;;  %p1171_p0 = scmp.lt.s32.totalorder %s1354_s26, %s1354_s26 }
  0x31   : > { %p1164_p11 = scmp.ne.s32.totalorder %s1354_s26, %s1163_s23  ;;  %p1172_p2 = scmp.lt.s32.totalorder %s1163_s23, %s1163_s23 }
  0x33   : > { %p1166_p12 = pnand %p1164_p11, %p1124_p9  ;;  %p1173_p3 = por %p1172_p2, %p1171_p0 }
  0x35   : > { %p1167_p13 = pneg %p1166_p12 }
  0x37   : > { %p1174_p6 = pnand %p1173_p3, %p1167_p13 }
  0x39   : > { %1177 = shalt.err (!%p1174_p6)
}
  0x3a   : > { %1038 = dma.hbm_to_vmem [thread:$0]  (!%p1350_p7), %s2054_s2, 128, %s1354_s26, [#allocation5]  }
  0x3b   : > { %s29_s5 = sadd.s32 1, %s1258_s16  ;;  %s36_s6 = sadd.s32 1, %s1250_s14 }
  0x3c   : > { %p31_p9 = scmp.ge.s32.totalorder %s29_s5, 2  ;;  %p43_p8 = scmp.ne.s32.totalorder %s1250_s14, %s1246_s13 }
  0x3d   : > { %p44_p1 = scmp.eq.s32.totalorder %s1262_s17, 0  ;;  %p1045_p4 = scmp.lt.s32.totalorder %s1262_s17, 2 }
  0x3e   : > { %s2166_s5 = smov (%p31_p9, %s29_s5), 0  ;;  %s173_s24 = sand.u32 1, %s1250_s14  }
  0x3f   : > { %p45_p5 = por %p44_p1, %p43_p8  ;;  %s33_s7 = ssub.s32 %s1258_s16, %s2166_s5 }
  0x40   : > { %p34_p10 = scmp.eq.s32.totalorder %s33_s7, 0  ;;  %s1013_s8 = sshll.u32 %s173_s24, 3 }
  0x41   : > { %s1014_s9 = sshll.u32 %s1258_s16, 7  ;;  %s177_s18 = scalar_lea.vmem [#allocation2], %s1013_s8 }
  0x42   : > { %s1416_s10 = scalar_select %p34_p10, %s1250_s14, %s36_s6  }
  0x43   : > { %s1421_s12 = scalar_lea.hbm %s2052_s0, %s1014_s9  ;;  %s184_s22 = sshll.u32 %s177_s18, 4  ;;  %s1423_s22 = int_to_ptr.vmem [resolvable:$true] %s184_s22 }
  0x44   : > { %p1427_p7 = pnand %p1045_p4, %p45_p5  ;;  %s174_s27 = scalar_lea.sflag [#allocation3], %s173_s24 }
  0x45   : > { %s1178_s28 = scalar_lea.hbm %s1421_s12, 128  ;;  %s1183_s30 = scalar_lea.hbm %s2052_s0, 256 }
  0x46   : > { %p1179_p11 = scmp.ne.s32.totalorder %s1421_s12, %s1178_s28  ;;  %p1180_p12 = pneg %p1427_p7 }
  0x47   : > { %p1184_p2 = scmp.lt.u32.totalorder %s1421_s12, %s2052_s0  ;;  %p1185_p3 = scmp.lt.u32.totalorder %s1183_s30, %s1178_s28 }
  0x48   : > { %p1181_p13 = pnand %p1180_p12, %p1179_p11  ;;  %p1187_p9 = scmp.lt.u32.totalorder %s1178_s28, %s1421_s12 }
  0x49   : > { %p1186_p6 = por %p1185_p3, %p1184_p2 }
  0x4a   : > { %p1182_p0 = pneg %p1181_p13 }
  0x4b   : > { %p1188_p8 = por %p1187_p9, %p1186_p6 }
  0x4d   : > { %p1189_p1 = pnand %p1188_p8, %p1182_p0 }
  0x4f   : > { %1192 = shalt.err (!%p1189_p1)
}
  0x50   : > { %s1193_s24 = scalar_lea.vmem %s1423_s22, 128  ;;  %s1268_s7 = smov [#allocation2]  }
  0x51   : > { %p1194_p4 = scmp.ne.s32.totalorder %s1423_s22, %s1193_s24  ;;  %s1198_s8 = sshll.u32 %s1268_s7, 4  ;;  %s1199_s8 = int_to_ptr.vmem [resolvable:$false] %s1198_s8 }
  0x52   : > { %s1200_s9 = scalar_lea.vmem %s1199_s8, 256  ;;  %p1201_p11 = scmp.lt.s32.totalorder %s1423_s22, %s1199_s8 }
  0x53   : > { %p1196_p5 = pnand %p1194_p4, %p1180_p12  ;;  %p1202_p13 = scmp.lt.s32.totalorder %s1200_s9, %s1193_s24 }
  0x55   : > { %p1197_p10 = pneg %p1196_p5  ;;  %p1203_p2 = por %p1202_p13, %p1201_p11 }
  0x57   : > { %p1204_p3 = pnand %p1203_p2, %p1197_p10 }
  0x59   : > { %1207 = shalt.err (!%p1204_p3)
}
  0x5a   : > { %1042 = dma.hbm_to_vmem [thread:$0]  (!%p1427_p7), %s1421_s12, 128, %s1423_s22, %s174_s27  }
  0x5b   : > { %p2077_p0 = scmp.ne.s32.totalorder %s2074_s21, 0 }
  0x5d   : > { %193 = sbr.rel (%p2077_p0) target bundleno = 470 (0x1d6), region = 32 }
  0x64   : > { %s195_s11 = sand.u32 1, %s1246_s13   ;;  %p2078_p12 = scmp.ne.s32.totalorder %s2073_s20, 0 }
  0x65   : > { %s1016_s26 = sshll.u32 %s195_s11, 3  ;;  %s196_s18 = scalar_lea.sflag [#allocation3], %s195_s11 }
  0x66   : > { %s199_s28 = scalar_lea.vmem [#allocation2], %s1016_s26 }
  0x67   : > { %1233 = dma.done.wait (%p2078_p12), %s196_s18, 128  }
  0x68   : > { %1235 = vsyncadd (%p2078_p12), %s196_s18, 4294967168  ;;  %p2079_p6 = scmp.ne.s32.totalorder %s2072_s19, 0 }
  0x6a   : > { %1237 = dma.done.wait (%p2079_p6), [#allocation5], 2176  }
  0x6b   : > { %1239 = vsyncadd (%p2079_p6), [#allocation5], 4294965120  ;;  %v1269_v0 = vmov 2   ;;  %v1270_v1 = vmov 0   ;;  %v240_v2 = vld [vmem:[%s199_s28] sm:$0xff]  ;;  %v1271_v3 = vmov 3   ;;  %v262_v12 = vlaneseq }
  0x6c   : > { %1113 = vset.pattern.permute.xlu1 %v1269_v0  ;;  %1111 = vset.pattern.permute.xlu0 %v1270_v1  ;;  %v1272_v4 = vmov 1   ;;  %v1273_v5 = vmov 4   ;;  %v1274_v6 = vmov 5   ;;  %v1275_v7 = vmov 6   ;;  %p230_p7 = scmp.lt.s32.totalorder %s1254_s15, 1  ;;  %v1478_v15 = vld [vmem:[#allocation4] sm:$0xff] }
  0x6d   : > { %371 = vperm.xlu1 %1113, %v240_v2   ;;  %259 = vperm.xlu0 %1111, %v240_v2   ;;  %v1276_v8 = vmov 8   ;;  %v1277_v9 = vmov 7   ;;  %v1278_v10 = vmov 9   ;;  %vm238_vm0 = vcmask 7168   ;;  %v1480_v16 = vld [vmem:[#allocation4 + $0x8] sm:$0xff]  ;;  %v1482_v17 = vld [vmem:[#allocation4 + $0x10] sm:$0xff] }
  0x6e   : > { %s2168_s15 = smov (!%p230_p7, %s1254_s15), 1  ;;  %v1279_v11 = vmov 0.0   ;;  %v263_v13 = vshrl.u32 %v262_v12, 7  ;;  %v1484_v18 = vld [vmem:[#allocation4 + $0x18] sm:$0xff]  ;;  %v1486_v19 = vld [vmem:[#allocation4 + $0x20] sm:$0xff]  ;;  %v1488_v20 = vld [vmem:[#allocation4 + $0x28] sm:$0xff] }
  0x6f   : > { %s1019_s19 = sshll.u32 %s2168_s15, 3  ;;  %v1492_v22 = vld [vmem:[#allocation4 + $0x30] sm:$0xff]  ;;  %v1494_v23 = vld [vmem:[#allocation4 + $0x38] sm:$0xff]  ;;  %v1600_v12 = vld [vmem:[#allocation4 + $0x40] sm:$0x3] }
  0x70   : > { %s1472_s12 = scalar_lea.vmem %s2055_s3, %s1019_s19  ;;  %v1476_v14 = vsub.s32 2, %v263_v13  ;;  %v1490_v21 = vsub.s32 0, %v263_v13  ;;  %v1496_v24 = vsub.s32 1, %v263_v13  ;;  %v1502_v27 = vsub.s32 3, %v263_v13  ;;  %v1646_v0 = vld [vmem:[#allocation4 + $0x78] sm:$0x3] }
  0x71   : > { %1114 = vset.pattern.permute.xlu1 %v1271_v3  ;;  %1112 = vset.pattern.permute.xlu0 %v1272_v4  ;;  %239 = vst.msk [vmem:[%s1472_s12] sm:$0xff] %vm238_vm0, %v1279_v11  ;;  %v1542_v47 = vsub.s32 4, %v263_v13  ;;  %v1558_v55 = vsub.s32 5, %v263_v13  ;;  %v1566_v59 = vsub.s32 6, %v263_v13  ;;  %v1582_v3 = vsub.s32 7, %v263_v13  ;;  %2085 = vst [vmem:[#allocation14_spill] sm:$0xff] %v1646_v0 }
  0x72   : > { %431 = vperm.xlu1 %1114, %v240_v2   ;;  %311 = vperm.xlu0 %1112, %v240_v2   ;;  %2080 = vst [vmem:[#allocation9_spill] sm:$0xff] %v1476_v14  ;;  %v377_v25 = vrot.slane %v1478_v15, %v1476_v14  ;;  %v381_v26 = vrot.slane %v1480_v16, %v1476_v14  ;;  %2081 = vst [vmem:[#allocation10_spill] sm:$0xff] %v1502_v27  ;;  %v1602_v13 = vld [vmem:[#allocation4 + $0x48] sm:$0x3]  ;;  %v1604_v4 = vld [vmem:[#allocation4 + $0x50] sm:$0x3] }
  0x73   : > { %v385_v28 = vrot.slane %v1482_v17, %v1476_v14  ;;  %v389_v29 = vrot.slane %v1484_v18, %v1476_v14  ;;  %v393_v30 = vrot.slane %v1486_v19, %v1476_v14  ;;  %v397_v31 = vrot.slane %v1488_v20, %v1476_v14  ;;  %v1616_v11 = vld [vmem:[#allocation4 + $0x60] sm:$0x3] }
  0x74   : > { %v401_v32 = vrot.slane %v1492_v22, %v1476_v14  ;;  %v405_v33 = vrot.slane %v1494_v23, %v1476_v14  ;;  %v265_v34 = vrot.slane %v1478_v15, %v1490_v21  ;;  %v269_v35 = vrot.slane %v1480_v16, %v1490_v21  ;;  %2082 = vst [vmem:[#allocation11_spill] sm:$0xff] %v1616_v11  ;;  %v1664_v61 = vld [vmem:[#allocation6] sm:$0xff] }
  0x75   : > { %v273_v36 = vrot.slane %v1482_v17, %v1490_v21  ;;  %v277_v37 = vrot.slane %v1484_v18, %v1490_v21  ;;  %v281_v38 = vrot.slane %v1486_v19, %v1490_v21  ;;  %v285_v39 = vrot.slane %v1488_v20, %v1490_v21  ;;  %2086 = vst [vmem:[#allocation15_spill] sm:$0xff] %v1664_v61 }
  0x76   : > { %1115 = vset.pattern.permute.xlu1 %v1273_v5  ;;  %1116 = vset.pattern.permute.xlu0 %v1274_v6  ;;  %v289_v40 = vrot.slane %v1492_v22, %v1490_v21  ;;  %v293_v41 = vrot.slane %v1494_v23, %v1490_v21  ;;  %v437_v42 = vrot.slane %v1478_v15, %v1502_v27  ;;  %v1642_v5 = vld [vmem:[#allocation4 + $0x68] sm:$0x3] }
  0x77   : > { %491 = vperm.xlu1 %1115, %v240_v2   ;;  %551 = vperm.xlu0 %1116, %v240_v2   ;;  %v441_v43 = vrot.slane %v1480_v16, %v1502_v27  ;;  %v445_v44 = vrot.slane %v1482_v17, %v1502_v27  ;;  %v449_v45 = vrot.slane %v1484_v18, %v1502_v27 }
  0x78   : > { %v453_v46 = vrot.slane %v1486_v19, %v1502_v27  ;;  %v317_v51 = vrot.slane %v1478_v15, %v1496_v24  ;;  %2083 = vst [vmem:[#allocation12_spill] sm:$0xff] %v1642_v5 }
  0x7b   : > { %1117 = vset.pattern.permute.xlu1 %v1275_v7  ;;  %1119 = vset.pattern.permute.xlu0 %v1276_v8  ;;  %v1614_v7 = vld [vmem:[#allocation4 + $0x58] sm:$0x3] }
  0x7c   : > { %611 = vperm.xlu1 %1117, %v240_v2   ;;  %731 = vperm.xlu0 %1119, %v240_v2  }
  0x80   : > { %1118 = vset.pattern.permute.xlu1 %v1277_v9  ;;  %1121 = vset.pattern.permute.xlu0 %v1278_v10 }
  0x81   : > { %671 = vperm.xlu1 %1118, %v240_v2  }
  0x85   : > { %1120 = vset.pattern.permute.xlu1 %v1278_v10  ;;  %v1644_v10 = vld [vmem:[#allocation4 + $0x70] sm:$0x3] }
  0x86   : > { %791 = vperm.xlu1 %1120, %v240_v2   ;;  %2084 = vst [vmem:[#allocation13_spill] sm:$0xff] %v1644_v10 }
  0xec   : > { %v372_v1 = vpop.permute.xlu1 %371  ;;  %v260_v60 = vpop.permute.xlu0 %259 }
  0xed   : > { %v406_v6 = vmul.f32 %v377_v25, %v372_v1  ;;  %v407_v2 = vmul.f32 %v381_v26, %v372_v1  ;;  %v408_v63 = vmul.f32 %v385_v28, %v372_v1  ;;  %v409_v62 = vmul.f32 %v389_v29, %v372_v1 }
  0xee   : > { %v410_v25 = vmul.f32 %v393_v30, %v372_v1  ;;  %v411_v26 = vmul.f32 %v397_v31, %v372_v1  ;;  %v412_v9 = vmul.f32 %v401_v32, %v372_v1  ;;  %v413_v28 = vmul.f32 %v405_v33, %v372_v1 }
  0xef   : > { %v294_v29 = vmul.f32 %v265_v34, %v260_v60  ;;  %v295_v30 = vmul.f32 %v269_v35, %v260_v60  ;;  %v296_v31 = vmul.f32 %v273_v36, %v260_v60  ;;  %v297_v32 = vmul.f32 %v277_v37, %v260_v60 }
  0xf0   : > { %v298_v33 = vmul.f32 %v281_v38, %v260_v60  ;;  %v299_v34 = vmul.f32 %v285_v39, %v260_v60  ;;  %v414_v1 = vadd.f32 0.5, %v406_v6  ;;  %v415_v8 = vadd.f32 0.5, %v407_v2 }
  0xf1   : > { %v300_v35 = vmul.f32 %v289_v40, %v260_v60  ;;  %v301_v36 = vmul.f32 %v293_v41, %v260_v60  ;;  %v416_v50 = vadd.f32 0.5, %v408_v63  ;;  %v417_v37 = vadd.f32 0.5, %v409_v62  ;;  %v432_v38 = vpop.permute.xlu1 %431  ;;  %v312_v48 = vpop.permute.xlu0 %311 }
  0xf2   : > { %v1742_v58 = vadd.f32 0.5, %v410_v25  ;;  %v1744_v57 = vadd.f32 0.5, %v411_v26  ;;  %v1746_v49 = vadd.f32 0.5, %v412_v9  ;;  %v1748_v39 = vadd.f32 0.5, %v413_v28 }
  0xf3   : > { %v302_v2 = vadd.f32 0.5, %v294_v29  ;;  %v303_v6 = vadd.f32 0.5, %v295_v30  ;;  %v304_v56 = vadd.f32 0.5, %v296_v31  ;;  %v305_v40 = vadd.f32 0.5, %v297_v32 }
  0xf4   : > { %2087 = vst [vmem:[#allocation16_spill] sm:$0xff] %v1746_v49  ;;  %2088 = vst [vmem:[#allocation17_spill] sm:$0xff] %v1748_v39  ;;  %v306_v54 = vadd.f32 0.5, %v298_v33  ;;  %v307_v53 = vadd.f32 0.5, %v299_v34  ;;  %v308_v52 = vadd.f32 0.5, %v300_v35  ;;  %v1750_v41 = vadd.f32 0.5, %v301_v36 }
  0xf5   : > { %v466_v60 = vmul.f32 %v437_v42, %v432_v38  ;;  %v467_v62 = vmul.f32 %v441_v43, %v432_v38  ;;  %v468_v63 = vmul.f32 %v445_v44, %v432_v38  ;;  %v469_v9 = vmul.f32 %v449_v45, %v432_v38 }
  0xf6   : > { %v470_v25 = vmul.f32 %v453_v46, %v432_v38  ;;  %v346_v42 = vmul.f32 %v317_v51, %v312_v48  ;;  %v2089_v26 = vrot.slane %v1480_v16, %v1496_v24  ;;  %v2090_v28 = vrot.slane %v1482_v17, %v1496_v24  ;;  %v1794_v61 = vpop.permute.xlu1 %491 }
  0xf7   : > { %v2091_v29 = vrot.slane %v1484_v18, %v1496_v24  ;;  %v2092_v30 = vrot.slane %v1486_v19, %v1496_v24  ;;  %v2093_v31 = vrot.slane %v1488_v20, %v1502_v27  ;;  %v2094_v32 = vrot.slane %v1492_v22, %v1502_v27 }
  0xf8   : > { %v347_v43 = vmul.f32 %v2089_v26, %v312_v48  ;;  %v348_v44 = vmul.f32 %v2090_v28, %v312_v48  ;;  %v2095_v34 = vrot.slane %v1488_v20, %v1496_v24  ;;  %v354_v36 = vadd.f32 0.5, %v346_v42 }
  0xf9   : > { %v349_v45 = vmul.f32 %v2091_v29, %v312_v48  ;;  %v350_v46 = vmul.f32 %v2092_v30, %v312_v48  ;;  %v471_v51 = vmul.f32 %v2093_v31, %v432_v38  ;;  %v472_v33 = vmul.f32 %v2094_v32, %v432_v38 }
  0xfa   : > { %v351_v35 = vmul.f32 %v2095_v34, %v312_v48  ;;  %v2096_v26 = vrot.slane %v1492_v22, %v1496_v24  ;;  %v355_v29 = vadd.f32 0.5, %v347_v43  ;;  %v356_v14 = vadd.f32 0.5, %v348_v44 }
  0xfb   : > { %v357_v30 = vadd.f32 0.5, %v349_v45  ;;  %v2097_v31 = vrot.slane %v1494_v23, %v1502_v27  ;;  %v474_v32 = vadd.f32 0.5, %v466_v60  ;;  %v358_v10 = vadd.f32 0.5, %v350_v46 }
  0xfc   : > { %v352_v28 = vmul.f32 %v2096_v26, %v312_v48  ;;  %v362_v5 = vmul.f32 %v354_v36, %v302_v2  ;;  %v475_v11 = vadd.f32 0.5, %v467_v62  ;;  %v2098_v42 = vrot.slane %v1494_v23, %v1496_v24 }
  0xfd   : > { %v1799_v0 = vmul.f32 %v2097_v31, %v432_v38  ;;  %v363_v39 = vmul.f32 %v355_v29, %v303_v6  ;;  %v364_v26 = vmul.f32 %v356_v14, %v304_v56  ;;  %v359_v43 = vadd.f32 0.5, %v351_v35  ;;  %v1816_v56 = vpop.permute.xlu0 %551  ;;  %v1824_v6 = vpop.permute.xlu1 %611 }
  0xfe   : > { %v353_v34 = vmul.f32 %v2098_v42, %v312_v48  ;;  %v365_v44 = vmul.f32 %v357_v30, %v305_v40  ;;  %v422_v45 = vmul.f32 %v414_v1, %v362_v5  ;;  %v2099_v49 = vrot.slane %v1478_v15, %v1542_v47 }
  0xff   : > { %v476_v38 = vadd.f32 0.5, %v468_v63  ;;  %v477_v31 = vadd.f32 0.5, %v469_v9  ;;  %v360_v60 = vadd.f32 0.5, %v352_v28  ;;  %v423_v46 = vmul.f32 %v415_v8, %v363_v39 }
 0x100   : > { %v526_v27 = vmul.f32 %v2099_v49, %v1794_v61  ;;  %v1808_v2 = vadd.f32 0.5, %v470_v25  ;;  %v1810_v62 = vadd.f32 0.5, %v471_v51  ;;  %v366_v36 = vmul.f32 %v358_v10, %v306_v54 }
 0x101   : > { %v2100_v14 = vrot.slane %v1480_v16, %v1542_v47  ;;  %v1818_v5 = vadd.f32 0.5, %v472_v33  ;;  %v424_v1 = vmul.f32 %v416_v50, %v364_v26  ;;  %v482_v49 = vmul.f32 %v474_v32, %v422_v45 }
 0x102   : > { %v2101_v8 = vrot.slane %v1482_v17, %v1542_v47  ;;  %v361_v40 = vadd.f32 0.5, %v353_v34  ;;  %v367_v54 = vmul.f32 %v359_v43, %v307_v53  ;;  %v425_v10 = vmul.f32 %v417_v37, %v365_v44 }
 0x103   : > { %v527_v48 = vmul.f32 %v2100_v14, %v1794_v61  ;;  %v534_v63 = vadd.f32 0.5, %v526_v27  ;;  %v368_v9 = vmul.f32 %v360_v60, %v308_v52  ;;  %v483_v25 = vmul.f32 %v475_v11, %v423_v46 }
 0x104   : > { %v528_v39 = vmul.f32 %v2101_v8, %v1794_v61  ;;  %v2102_v33 = vrot.slane %v1478_v15, %v1558_v55  ;;  %v426_v35 = vmul.f32 %v1742_v58, %v366_v36  ;;  %v2103_v28 = vrot.slane %v1484_v18, %v1542_v47 }
 0x105   : > { %v535_v51 = vadd.f32 0.5, %v527_v48  ;;  %v2104_v53 = vrot.slane %v1486_v19, %v1542_v47  ;;  %v2105_v52 = vrot.slane %v1480_v16, %v1558_v55  ;;  %v484_v37 = vmul.f32 %v476_v38, %v424_v1  ;;  %v1863_v1 = vpop.permute.xlu1 %671 }
 0x106   : > { %v586_v50 = vmul.f32 %v2102_v33, %v1816_v56  ;;  %v529_v29 = vmul.f32 %v2103_v28, %v1794_v61  ;;  %v536_v30 = vadd.f32 0.5, %v528_v39  ;;  %v542_v32 = vmul.f32 %v534_v63, %v482_v49 }
 0x107   : > { %v530_v27 = vmul.f32 %v2104_v53, %v1794_v61  ;;  %v587_v11 = vmul.f32 %v2105_v52, %v1816_v56  ;;  %v2106_v58 = vrot.slane %v1482_v17, %v1558_v55  ;;  %v485_v34 = vmul.f32 %v477_v31, %v425_v10 }
 0x108   : > { %v2107_v26 = vrot.slane %v1488_v20, %v1542_v47  ;;  %v2108_v44 = vrot.slane %v1492_v22, %v1542_v47  ;;  %v594_v60 = vadd.f32 0.5, %v586_v50  ;;  %v543_v38 = vmul.f32 %v535_v51, %v483_v25 }
 0x109   : > { %v588_v42 = vmul.f32 %v2106_v58, %v1816_v56  ;;  %v595_v46 = vadd.f32 0.5, %v587_v11  ;;  %v2109_v36 = vrot.slane %v1478_v15, %v1566_v59  ;;  %v2110_v31 = vrot.slane %v1480_v16, %v1566_v59 }
 0x10a   : > { %v531_v43 = vmul.f32 %v2107_v26, %v1794_v61  ;;  %v532_v45 = vmul.f32 %v2108_v44, %v1794_v61  ;;  %v537_v49 = vadd.f32 0.5, %v529_v29  ;;  %v538_v8 = vadd.f32 0.5, %v530_v27 }
 0x10b   : > { %v646_v14 = vmul.f32 %v2109_v36, %v1824_v6  ;;  %v647_v48 = vmul.f32 %v2110_v31, %v1824_v6  ;;  %v2111_v39 = vrot.slane %v1484_v18, %v1558_v55  ;;  %v2112_v63 = vrot.slane %v1486_v19, %v1558_v55 }
 0x10c   : > { %v544_v51 = vmul.f32 %v536_v30, %v484_v37  ;;  %v596_v33 = vadd.f32 0.5, %v588_v42  ;;  %v602_v50 = vmul.f32 %v594_v60, %v542_v32  ;;  %v2113_v28 = vrot.slane %v1482_v17, %v1566_v59 }
 0x10d   : > { %v589_v10 = vmul.f32 %v2111_v39, %v1816_v56  ;;  %v590_v25 = vmul.f32 %v2112_v63, %v1816_v56  ;;  %v2114_v29 = vrot.slane %v1484_v18, %v1566_v59  ;;  %v654_v52 = vadd.f32 0.5, %v646_v14  ;;  %v1897_v63 = vpop.permute.xlu0 %731 }
 0x10e   : > { %v648_v53 = vmul.f32 %v2113_v28, %v1824_v6  ;;  %v2115_v11 = vrot.slane %v1478_v15, %v1582_v3  ;;  %v2116_v37 = vrot.slane %v1480_v16, %v1582_v3  ;;  %v539_v32 = vadd.f32 0.5, %v531_v43 }
 0x10f   : > { %v649_v27 = vmul.f32 %v2114_v29, %v1824_v6  ;;  %v603_v42 = vmul.f32 %v595_v46, %v543_v38  ;;  %v655_v26 = vadd.f32 0.5, %v647_v48  ;;  %v2117_v44 = vrot.slane %v1482_v17, %v1582_v3 }
 0x110   : > { %v706_v58 = vmul.f32 %v2115_v11, %v1863_v1  ;;  %v707_v30 = vmul.f32 %v2116_v37, %v1863_v1  ;;  %v545_v36 = vmul.f32 %v537_v49, %v485_v34  ;;  %v2118_v14 = vrot.slane %v1488_v20, %v1558_v55 }
 0x111   : > { %v708_v60 = vmul.f32 %v2117_v44, %v1863_v1  ;;  %v597_v31 = vadd.f32 0.5, %v589_v10  ;;  %v598_v39 = vadd.f32 0.5, %v590_v25  ;;  %v604_v16 = vmul.f32 %v596_v33, %v544_v51 }
 0x112   : > { %v591_v15 = vmul.f32 %v2118_v14, %v1816_v56  ;;  %v2119_v43 = vrot.slane %v1486_v19, %v1566_v59  ;;  %v656_v46 = vadd.f32 0.5, %v648_v53  ;;  %v714_v48 = vadd.f32 0.5, %v706_v58  ;;  %v2126_v14 = vld [vmem:[#allocation17_spill] sm:$0xff] }
 0x113   : > { %v657_v17 = vadd.f32 0.5, %v649_v27  ;;  %v2120_v34 = vrot.slane %v1484_v18, %v1582_v3  ;;  %v715_v28 = vadd.f32 0.5, %v707_v30  ;;  %v662_v29 = vmul.f32 %v654_v52, %v602_v50 }
 0x114   : > { %v650_v38 = vmul.f32 %v2119_v43, %v1824_v6  ;;  %v716_v10 = vadd.f32 0.5, %v708_v60  ;;  %v663_v25 = vmul.f32 %v655_v26, %v603_v42  ;;  %v2121_v51 = vrot.slane %v1600_v12, %v1490_v21  ;;  %v2125_v42 = vld [vmem:[#allocation16_spill] sm:$0xff] }
 0x115   : > { %v709_v49 = vmul.f32 %v2120_v34, %v1863_v1  ;;  %v2122_v53 = vrot.slane %v1602_v13, %v1490_v21  ;;  %v2123_v27 = vrot.slane %v1604_v4, %v1490_v21  ;;  %v2124_v50 = vrot.slane %v1614_v7, %v1490_v21 }
 0x116   : > { %v766_v33 = vmul.f32 %v2121_v51, %v1897_v63  ;;  %v369_v58 = vmul.f32 %v361_v40, %v1750_v41  ;;  %v427_v37 = vmul.f32 %v1744_v57, %v367_v54  ;;  %v722_v30 = vmul.f32 %v714_v48, %v662_v29 }
 0x117   : > { %v767_v11 = vmul.f32 %v2122_v53, %v1897_v63  ;;  %v768_v18 = vmul.f32 %v2123_v27, %v1897_v63  ;;  %v769_v52 = vmul.f32 %v2124_v50, %v1897_v63  ;;  %v428_v26 = vmul.f32 %v2125_v42, %v368_v9 }
 0x118   : > { %v481_v44 = vadd.f32 0.5, %v1799_v0  ;;  %v486_v60 = vmul.f32 %v1808_v2, %v426_v35  ;;  %v429_v43 = vmul.f32 %v2126_v14, %v369_v58  ;;  %v487_v34 = vmul.f32 %v1810_v62, %v427_v37 }
 0x119   : > { %v2127_v51 = vrot.slane %v1494_v23, %v1542_v47  ;;  %v540_v27 = vadd.f32 0.5, %v532_v45  ;;  %v488_v41 = vmul.f32 %v1818_v5, %v428_v26  ;;  %v2128_v40 = vrot.slane %v1492_v22, %v1558_v55  ;;  %v2130_v5 = vld [vmem:[#allocation11_spill] sm:$0xff] }
 0x11a   : > { %v546_v57 = vmul.f32 %v538_v8, %v486_v60  ;;  %v2129_v2 = vrot.slane %v1494_v23, %v1558_v55  ;;  %v489_v62 = vmul.f32 %v481_v44, %v429_v43  ;;  %v547_v35 = vmul.f32 %v539_v32, %v487_v34 }
 0x11b   : > { %v533_v53 = vmul.f32 %v2127_v51, %v1794_v61  ;;  %v592_v0 = vmul.f32 %v2128_v40, %v1816_v56  ;;  %v599_v48 = vadd.f32 0.5, %v591_v15  ;;  %v723_v29 = vmul.f32 %v715_v28, %v663_v25  ;;  %v792_v51 = vpop.permute.xlu1 %791 }
 0x11c   : > { %v593_v54 = vmul.f32 %v2129_v2, %v1816_v56  ;;  %v548_v61 = vmul.f32 %v540_v27, %v488_v41  ;;  %v2131_v8 = vrot.slane %v2130_v5, %v1490_v21  ;;  %v774_v37 = vadd.f32 0.5, %v766_v33 }
 0x11d   : > { %v541_v9 = vadd.f32 0.5, %v533_v53  ;;  %v600_v45 = vadd.f32 0.5, %v592_v0  ;;  %v2132_v26 = vrot.slane %v1488_v20, %v1566_v59  ;;  %v775_v44 = vadd.f32 0.5, %v767_v11 }
 0x11e   : > { %v601_v50 = vadd.f32 0.5, %v593_v54  ;;  %v770_v58 = vmul.f32 %v2131_v8, %v1897_v63  ;;  %v776_v60 = vadd.f32 0.5, %v768_v18  ;;  %v2133_v32 = vrot.slane %v1492_v22, %v1566_v59 }
 0x11f   : > { %v549_v42 = vmul.f32 %v541_v9, %v489_v62  ;;  %v651_v56 = vmul.f32 %v2132_v26, %v1824_v6  ;;  %v2134_v28 = vrot.slane %v1494_v23, %v1566_v59  ;;  %v777_v14 = vadd.f32 0.5, %v769_v52  ;;  %v2143_v26 = vld [vmem:[#allocation13_spill] sm:$0xff] }
 0x120   : > { %v652_v15 = vmul.f32 %v2133_v32, %v1824_v6  ;;  %v605_v33 = vmul.f32 %v597_v31, %v545_v36  ;;  %v606_v43 = vmul.f32 %v598_v39, %v546_v57  ;;  %v607_v34 = vmul.f32 %v599_v48, %v547_v35 }
 0x121   : > { %v653_v25 = vmul.f32 %v2134_v28, %v1824_v6  ;;  %v608_v53 = vmul.f32 %v600_v45, %v548_v61  ;;  %v609_v27 = vmul.f32 %v601_v50, %v549_v42  ;;  %v658_v41 = vadd.f32 0.5, %v650_v38  ;;  %v2141_v50 = vld [vmem:[#allocation12_spill] sm:$0xff] }
 0x122   : > { %v2135_v11 = vrot.slane %v1486_v19, %v1582_v3  ;;  %v659_v40 = vadd.f32 0.5, %v651_v56  ;;  %v660_v0 = vadd.f32 0.5, %v652_v15  ;;  %v664_v2 = vmul.f32 %v656_v46, %v604_v16 }
 0x123   : > { %v2136_v6 = vrot.slane %v1488_v20, %v1582_v3  ;;  %v661_v36 = vadd.f32 0.5, %v653_v25  ;;  %v2137_v31 = vrot.slane %v1492_v22, %v1582_v3  ;;  %v717_v38 = vadd.f32 0.5, %v709_v49 }
 0x124   : > { %v710_v18 = vmul.f32 %v2135_v11, %v1863_v1  ;;  %v782_v54 = vmul.f32 %v774_v37, %v722_v30  ;;  %v2138_v19 = vrot.slane %v1600_v12, %v1496_v24  ;;  %v2139_v16 = vrot.slane %v1602_v13, %v1496_v24 }
 0x125   : > { %v711_v52 = vmul.f32 %v2136_v6, %v1863_v1  ;;  %v712_v39 = vmul.f32 %v2137_v31, %v1863_v1  ;;  %v665_v9 = vmul.f32 %v657_v17, %v605_v33  ;;  %v666_v20 = vmul.f32 %v658_v41, %v606_v43 }
 0x126   : > { %v718_v57 = vadd.f32 0.5, %v710_v18  ;;  %v826_v62 = vmul.f32 %v2138_v19, %v792_v51  ;;  %v827_v46 = vmul.f32 %v2139_v16, %v792_v51  ;;  %v2140_v35 = vrot.slane %v1494_v23, %v1582_v3 }
 0x127   : > { %v719_v22 = vadd.f32 0.5, %v711_v52  ;;  %v724_v61 = vmul.f32 %v716_v10, %v664_v2  ;;  %v783_v49 = vmul.f32 %v775_v44, %v723_v29  ;;  %v667_v45 = vmul.f32 %v659_v40, %v607_v34  ;;  %v2148_v34 = vld [vmem:[#allocation14_spill] sm:$0xff] }
 0x128   : > { %v713_v48 = vmul.f32 %v2140_v35, %v1863_v1  ;;  %v725_v30 = vmul.f32 %v717_v38, %v665_v9  ;;  %v2142_v12 = vrot.slane %v2141_v50, %v1490_v21  ;;  %v668_v37 = vmul.f32 %v660_v0, %v608_v53  ;;  %v2153_v9 = vld [vmem:[#allocation15_spill] sm:$0xff] }
 0x129   : > { %v669_v13 = vmul.f32 %v661_v36, %v609_v27  ;;  %v720_v42 = vadd.f32 0.5, %v712_v39  ;;  %v726_v17 = vmul.f32 %v718_v57, %v666_v20  ;;  %v2144_v56 = vrot.slane %v2143_v26, %v1490_v21 }
 0x12a   : > { %v771_v8 = vmul.f32 %v2142_v12, %v1897_v63  ;;  %v778_v1 = vadd.f32 0.5, %v770_v58  ;;  %v2145_v10 = vrot.slane %v1604_v4, %v1496_v24  ;;  %v2146_v44 = vrot.slane %v1614_v7, %v1496_v24 }
 0x12b   : > { %v772_v23 = vmul.f32 %v2144_v56, %v1897_v63  ;;  %v721_v15 = vadd.f32 0.5, %v713_v48  ;;  %v727_v28 = vmul.f32 %v719_v22, %v667_v45  ;;  %v784_v25 = vmul.f32 %v776_v60, %v724_v61 }
 0x12c   : > { %v828_v29 = vmul.f32 %v2145_v10, %v792_v51  ;;  %v829_v32 = vmul.f32 %v2146_v44, %v792_v51  ;;  %v2147_v33 = vrot.slane %v2130_v5, %v1496_v24  ;;  %v2149_v53 = vrot.slane %v2148_v34, %v1490_v21 }
 0x12d   : > { %v779_v27 = vadd.f32 0.5, %v771_v8  ;;  %v785_v41 = vmul.f32 %v777_v14, %v725_v30  ;;  %v2150_v4 = vrot.slane %v2141_v50, %v1496_v24  ;;  %v834_v7 = vadd.f32 0.5, %v826_v62  ;;  %v2156_v30 = vld [vmem:[#allocation9_spill] sm:$0xff] }
 0x12e   : > { %v830_v43 = vmul.f32 %v2147_v33, %v792_v51  ;;  %v773_v58 = vmul.f32 %v2149_v53, %v1897_v63  ;;  %v835_v18 = vadd.f32 0.5, %v827_v46  ;;  %v836_v40 = vadd.f32 0.5, %v828_v29 }
 0x12f   : > { %v831_v11 = vmul.f32 %v2150_v4, %v792_v51  ;;  %v837_v0 = vadd.f32 0.5, %v829_v32  ;;  %v728_v60 = vmul.f32 %v720_v42, %v668_v37  ;;  %v780_v2 = vadd.f32 0.5, %v772_v23 }
 0x130   : > { %v786_v6 = vmul.f32 %v778_v1, %v726_v17  ;;  %v2151_v5 = vrot.slane %v2143_v26, %v1496_v24  ;;  %v838_v36 = vadd.f32 0.5, %v830_v43  ;;  %v842_v31 = vmul.f32 %v834_v7, %v782_v54  ;;  %v851_v43 = vld [vmem:[%s1472_s12] sm:$0xff] }
 0x131   : > { %v843_v63 = vmul.f32 %v835_v18, %v783_v49  ;;  %v844_v39 = vmul.f32 %v836_v40, %v784_v25  ;;  %v729_v14 = vmul.f32 %v721_v15, %v669_v13  ;;  %v781_v38 = vadd.f32 0.5, %v773_v58 }
 0x132   : > { %v832_v52 = vmul.f32 %v2151_v5, %v792_v51  ;;  %v787_v57 = vmul.f32 %v779_v27, %v727_v28  ;;  %v2152_v19 = vrot.slane %v2148_v34, %v1496_v24  ;;  %v839_v16 = vadd.f32 0.5, %v831_v11 }
 0x133   : > { %v845_v46 = vmul.f32 %v837_v0, %v785_v41  ;;  %v2154_v20 = vrot.slane %v2153_v9, %v1490_v21  ;;  %v2155_v48 = vrot.slane %v2153_v9, %v1496_v24  ;;  %v788_v54 = vmul.f32 %v780_v2, %v728_v60  ;;  %v2158_v24 = vld [vmem:[#allocation10_spill] sm:$0xff] }
 0x134   : > { %v833_v62 = vmul.f32 %v2152_v19, %v792_v51  ;;  %v872_v61 = vrot.slane %v2153_v9, %v1542_v47  ;;  %v840_v49 = vadd.f32 0.5, %v832_v52  ;;  %v846_v45 = vmul.f32 %v838_v36, %v786_v6 }
 0x135   : > { %v893_v35 = vmul.f32 %v2154_v20, %v842_v31  ;;  %v894_v22 = vmul.f32 %v2155_v48, %v843_v63  ;;  %v2157_v50 = vrot.slane %v2153_v9, %v2156_v30  ;;  %v789_v8 = vmul.f32 %v781_v38, %v729_v14 }
 0x136   : > { %v876_v21 = vrot.slane %v2153_v9, %v1558_v55  ;;  %v841_v37 = vadd.f32 0.5, %v833_v62  ;;  %v847_v13 = vmul.f32 %v839_v16, %v787_v57  ;;  %v2159_v42 = vrot.slane %v2153_v9, %v2158_v24 }
 0x137   : > { %v895_v51 = vmul.f32 %v2157_v50, %v844_v39  ;;  %v901_v12 = vadd.f32 %v894_v22, %v893_v35  ;;  %v848_v47 = vmul.f32 %v840_v49, %v788_v54  ;;  %v880_v56 = vrot.slane %v2153_v9, %v1566_v59 }
 0x138   : > { %v896_v17 = vmul.f32 %v2159_v42, %v845_v46  ;;  %v897_v23 = vmul.f32 %v872_v61, %v846_v45  ;;  %v849_v10 = vmul.f32 %v841_v37, %v789_v8  ;;  %v884_v29 = vrot.slane %v2153_v9, %v1582_v3 }
 0x139   : > { %v902_v26 = vadd.f32 %v901_v12, %v895_v51  ;;  %v898_v55 = vmul.f32 %v876_v21, %v847_v13  ;;  %v899_v32 = vmul.f32 %v880_v56, %v848_v47 }
 0x13a   : > { %v900_v28 = vmul.f32 %v884_v29, %v849_v10 }
 0x13b   : > { %v903_v1 = vadd.f32 %v902_v26, %v896_v17 }
 0x13d   : > { %v904_v44 = vadd.f32 %v903_v1, %v897_v23 }
 0x13f   : > { %v905_v15 = vadd.f32 %v904_v44, %v898_v55 }
 0x141   : > { %v906_v25 = vadd.f32 %v905_v15, %v899_v32 }
 0x143   : > { %v907_v33 = vadd.f32 %v906_v25, %v900_v28 }
 0x145   : > { %908 = vadd.xlane.f32.xlu1 %v907_v33 }
 0x1d2   : > { %v909_v34 = vpop.xlane.xlu1 %908 }
 0x1d3   : > { %v910_v53 = vadd.f32 %v909_v34, %v851_v43 }
 0x1d5   : > { %912 = vst.msk [vmem:[%s1472_s12] sm:$0xff] %vm238_vm0, %v910_v53 }
 0x1d6 PF: > { %s17_s17 = sadd.s32 1, %s1262_s17   ;;  %s2160_s12 = smov %s1246_s13 }
 0x1d7   : > { %p14_p9 = scmp.ge.s32.totalorder %s17_s17, 4   ;;  %s2161_s13 = smov %s1250_s14 }
 0x1d8   : > { %s2162_s14 = smov %s1416_s10  ;;  %s2163_s15 = smov %s1258_s16 }
 0x1d9   : > { %s2164_s16 = smov %s2166_s5  ;;  %16 = sbr.rel (!%p14_p9) target bundleno = 5 (0x5), region = 85 }
 0x1e0   :  { %932 = vsyncpa [#allocation3], 1 }
 0x1e1   :  { %934 = vsyncpa [#allocation3 + $0x1], 1 }
 0x1e2   :  { %935 = vsyncpa [#allocation5], 1 }

</bundles_post_ra>
